<compile_context>
chip_gen: v6e
topology: v6e:2x2x1
jax: 0.10.0
libtpu: 0.0.40
codegen_flags: <defaults>
</compile_context>

<pallas_src>
import functools

import jax
import jax.numpy as jnp
from jax.experimental import pallas as pl
from jax.experimental.pallas import tpu as pltpu


def _round_up(x, m):
    return ((x + m - 1) // m) * m


def _default_pack(input_size):
    """Batch rows packed per lane-row, chosen per TPU generation.

    v5e:    128-deep MXU K dim -> pack*input_size = 128 is native fill; its
            f32 multi-pass MXU work is the likely binding unit, so don't
            inflate the block-diagonal FLOPs further.
    v6e/v7x: 256-deep MXU K dim -> pack*input_size = 256 doubles MXU fill at
            unchanged HBM bytes per batch row.
    """
    try:
        kind = jax.devices()[0].device_kind.lower()
    except Exception:
        kind = ""
    target_k = 128 if "v5" in kind else 256
    return max(1, target_k // int(input_size))


def _mlp_kernel(x_ref, w1_ref, w2_ref, w3_ref, o_ref):
    # Three fused MXU matmuls + two ReLUs, f32 accumulation throughout.
    h = jnp.dot(x_ref[...], w1_ref[...], preferred_element_type=jnp.float32)
    h = jnp.maximum(h, 0.0).astype(w2_ref.dtype)
    h = jnp.dot(h, w2_ref[...], preferred_element_type=jnp.float32)
    h = jnp.maximum(h, 0.0).astype(w3_ref.dtype)
    o_ref[...] = jnp.dot(h, w3_ref[...],
                         preferred_element_type=jnp.float32).astype(o_ref.dtype)


def prepare_packed_weights(w1, w2, w3, *, pack=None, dtype=jnp.float32):
    """One-time weight preparation (hoisted off the forward hot path).

    Takes PyTorch nn.Linear weight layouts (out_features, in_features):
      w1: (11, input_size), w2: (6, 11), w3: (output_size, 6)
    Returns block-diagonal (in, out) matrices with `pack` copies of Wᵀ each:
      (pack*in, pack*11), (pack*11, pack*6), (pack*6, pack*out).
    `dtype=jnp.bfloat16` halves HBM traffic (f32 accumulation is kept in the
    kernel) at ~1e-2 relative tolerance; default f32 matches PyTorch exactly.
    """
    input_size = w1.shape[1]
    if pack is None:
        pack = _default_pack(input_size)
    eye = jnp.eye(pack, dtype=dtype)
    w1_blk = jnp.kron(eye, w1.T.astype(dtype))
    w2_blk = jnp.kron(eye, w2.T.astype(dtype))
    w3_blk = jnp.kron(eye, w3.T.astype(dtype))
    return w1_blk, w2_blk, w3_blk


@functools.partial(jax.jit, static_argnames=("block_rows",))
def neural_net_forward(x, w1_blk, w2_blk, w3_blk, *, block_rows=4096):
    """Forward pass of NeuralNet using lane-packed block-diagonal weights.

    Args:
      x:        (B, input_size) array.
      w*_blk:   outputs of prepare_packed_weights (block-diagonal, (in, out)).
      block_rows: max packed-row tile size (each packed row = `pack` batch rows).
    Returns:
      (B, output_size) float32.
    """
    B, input_size = x.shape
    packed_in = w1_blk.shape[0]
    hidden1 = w1_blk.shape[1]
    hidden2 = w2_blk.shape[1]
    packed_out = w3_blk.shape[1]
    pack = packed_in // input_size
    assert pack * input_size == packed_in, "weights packed for a different input_size"
    assert hidden1 == w2_blk.shape[0] and hidden2 == w3_blk.shape[0]
    out_size = packed_out // pack
    # Lane density holds when packed_in % 128 == 0 (true for input_size=16 with
    # pack in {8, 16, 32}); other sizes still compute correctly, just slower.

    # --- pack the batch: pad only to a multiple of `pack` (<= pack-1 rows) ---
    bp = pl.cdiv(B, pack)
    b_pad = bp * pack
    if b_pad != B:
        x = jnp.pad(x, ((0, b_pad - B), (0, 0)))
    xp = x.reshape(bp, packed_in).astype(w1_blk.dtype)  # free row-major merge

    # --- tile choice -------------------------------------------------------
    # Big tiles amortize the ~0.35us/step pipeline overhead; keep >=2 grid
    # steps when possible so both v7x TensorCores get work.
    if bp > block_rows:
        tb = min(_round_up(block_rows, 8), bp)
    else:
        half = _round_up(pl.cdiv(bp, 2), 8)      # 8-sublane-aligned half split
        tb = half if half < bp else bp           # else one full-extent tile
    n_tiles = pl.cdiv(bp, tb)                    # partial last block is masked

    # --- cost hint: memory-bound matmul chain ------------------------------
    itemsize = jnp.dtype(w1_blk.dtype).itemsize
    flops = 2 * bp * (packed_in * hidden1 + hidden1 * hidden2
                      + hidden2 * packed_out)
    bytes_accessed = (xp.size * itemsize + bp * packed_out * 4
                      + (w1_blk.size + w2_blk.size + w3_blk.size) * itemsize)
    cost = pl.CostEstimate(flops=flops, transcendentals=0,
                           bytes_accessed=bytes_accessed)

    out_packed = pl.pallas_call(
        _mlp_kernel,
        out_shape=jax.ShapeDtypeStruct((bp, packed_out), jnp.float32),
        grid=(n_tiles,),
        in_specs=[
            # x tiles stream through VMEM (double-buffered by the pipeline).
            pl.BlockSpec((tb, packed_in), lambda i: (i, 0)),
            # Weights: full blocks, constant index_map -> VMEM-resident.
            pl.BlockSpec(w1_blk.shape, lambda i: (0, 0)),
            pl.BlockSpec(w2_blk.shape, lambda i: (0, 0)),
            pl.BlockSpec(w3_blk.shape, lambda i: (0, 0)),
        ],
        out_specs=pl.BlockSpec((tb, packed_out), lambda i: (i, 0)),
        compiler_params=pltpu.CompilerParams(
            dimension_semantics=("parallel",),
            # Large tiles overrun v5e's 16 MiB default scoped VMEM; 32 MiB is
            # the default on v6e/v7x and well within every chip's physical VMEM.
            vmem_limit_bytes=32 * 1024 * 1024,
        ),
        cost_estimate=cost,
    )(xp, w1_blk, w2_blk, w3_blk)

    # Unpack lanes back to (B, output_size); drop padded rows.
    return out_packed.reshape(b_pad, out_size)[:B]


def _reference_forward(x, w1, w2, w3):
    h = jnp.maximum(x @ w1.T, 0.0)
    h = jnp.maximum(h @ w2.T, 0.0)
    return h @ w3.T


if __name__ == "__main__":
    # Small shapes consistent with the module. batch is deliberately NOT a
    # multiple of the pack factor or tile size: exercises the tiny pad,
    # the 2-tile megacore split and the masked partial last block.
    batch = 200
    input_size = 16
    output_size = 4

    key = jax.random.PRNGKey(0)
    kx, k1, k2, k3 = jax.random.split(key, 4)

    x = jax.random.normal(kx, (batch, input_size), dtype=jnp.float32)
    # nn.Linear weight layout: (out_features, in_features), bias-free.
    w1 = jax.random.normal(k1, (11, input_size), dtype=jnp.float32) * 0.1
    w2 = jax.random.normal(k2, (6, 11), dtype=jnp.float32) * 0.1
    w3 = jax.random.normal(k3, (output_size, 6), dtype=jnp.float32) * 0.1

    # One-time weight prep (model init), off the forward hot path.
    w1_blk, w2_blk, w3_blk = prepare_packed_weights(w1, w2, w3)

    out = neural_net_forward(x, w1_blk, w2_blk, w3_blk)
    out = jax.block_until_ready(out)

    ref = _reference_forward(x, w1, w2, w3)
    assert out.shape == (batch, output_size)
    assert jnp.allclose(out, ref, atol=1e-5, rtol=1e-5), "mismatch vs reference"

    print("KERNEL_OK")
</pallas_src>

<mosaic_0001>
module attributes {stable_mosaic.version = 11 : i64} {
  func.func @_mlp_kernel(%arg0: i32, %arg1: memref<8x256xf32, #tpu.memory_space<vmem>>, %arg2: memref<256x176xf32, #tpu.memory_space<vmem>>, %arg3: memref<176x96xf32, #tpu.memory_space<vmem>>, %arg4: memref<96x64xf32, #tpu.memory_space<vmem>>, %arg5: memref<8x64xf32, #tpu.memory_space<vmem>>) attributes {dimension_semantics = [#tpu.dimension_semantics<parallel>], iteration_bounds = array<i64: 2>, scalar_prefetch = 0 : i64, scratch_operands = 0 : i64, tpu.core_type = #tpu.core_type<tc>, window_params = [{transform_indices = @transform_0, window_bounds = array<i64: 8, 256>}, {pipeline_mode = #tpu.pipeline_mode<synchronous>, transform_indices = @transform_1, window_bounds = array<i64: 256, 176>}, {pipeline_mode = #tpu.pipeline_mode<synchronous>, transform_indices = @transform_2, window_bounds = array<i64: 176, 96>}, {pipeline_mode = #tpu.pipeline_mode<synchronous>, transform_indices = @transform_3, window_bounds = array<i64: 96, 64>}, {transform_indices = @transform_4, window_bounds = array<i64: 8, 64>}]} {
    %c0 = arith.constant 0 : index
    %c0_0 = arith.constant 0 : index
    %0 = vector.load %arg1[%c0, %c0_0] : memref<8x256xf32, #tpu.memory_space<vmem>>, vector<8x256xf32>
    %c0_1 = arith.constant 0 : index
    %c0_2 = arith.constant 0 : index
    %1 = vector.load %arg2[%c0_1, %c0_2] : memref<256x176xf32, #tpu.memory_space<vmem>>, vector<256x176xf32>
    %cst = arith.constant dense<0.000000e+00> : vector<8x176xf32>
    %2 = tpu.matmul %0, %1, %cst {dimension_numbers = #tpu.dot_dimension_numbers<[1], [0], [0], [1], [0, 0, 1, 1], [], []>} : vector<8x256xf32>, vector<256x176xf32>, vector<8x176xf32> -> vector<8x176xf32>
    %cst_3 = arith.constant 0.000000e+00 : f32
    %3 = vector.broadcast %cst_3 : f32 to vector<8x176xf32>
    %4 = arith.maximumf %2, %3 : vector<8x176xf32>
    %c0_4 = arith.constant 0 : index
    %c0_5 = arith.constant 0 : index
    %5 = vector.load %arg3[%c0_4, %c0_5] : memref<176x96xf32, #tpu.memory_space<vmem>>, vector<176x96xf32>
    %cst_6 = arith.constant dense<0.000000e+00> : vector<8x96xf32>
    %6 = tpu.matmul %4, %5, %cst_6 {dimension_numbers = #tpu.dot_dimension_numbers<[1], [0], [0], [1], [0, 0, 1, 1], [], []>} : vector<8x176xf32>, vector<176x96xf32>, vector<8x96xf32> -> vector<8x96xf32>
    %cst_7 = arith.constant 0.000000e+00 : f32
    %7 = vector.broadcast %cst_7 : f32 to vector<8x96xf32>
    %8 = arith.maximumf %6, %7 : vector<8x96xf32>
    %c0_8 = arith.constant 0 : index
    %c0_9 = arith.constant 0 : index
    %9 = vector.load %arg4[%c0_8, %c0_9] : memref<96x64xf32, #tpu.memory_space<vmem>>, vector<96x64xf32>
    %cst_10 = arith.constant dense<0.000000e+00> : vector<8x64xf32>
    %10 = tpu.matmul %8, %9, %cst_10 {dimension_numbers = #tpu.dot_dimension_numbers<[1], [0], [0], [1], [0, 0, 1, 1], [], []>} : vector<8x96xf32>, vector<96x64xf32>, vector<8x64xf32> -> vector<8x64xf32>
    %c0_11 = arith.constant 0 : index
    %c0_12 = arith.constant 0 : index
    %11 = vector.load %arg5[%c0_11, %c0_12] : memref<8x64xf32, #tpu.memory_space<vmem>>, vector<8x64xf32>
    tpu.vector_store %arg5[%c0_11, %c0_12], %10 {strides = array<i32>} : memref<8x64xf32, #tpu.memory_space<vmem>>, vector<8x64xf32>,
    return
  }
  func.func @transform_0(%arg0: i32) -> (i32, i32) {
    %c0_i32 = arith.constant 0 : i32
    %c0_i32_0 = arith.constant 0 : i32
    return %arg0, %c0_i32 : i32, i32
  }
  func.func @transform_1(%arg0: i32) -> (i32, i32) {
    %c0_i32 = arith.constant 0 : i32
    %c0_i32_0 = arith.constant 0 : i32
    %c0_i32_1 = arith.constant 0 : i32
    return %c0_i32, %c0_i32_0 : i32, i32
  }
  func.func @transform_2(%arg0: i32) -> (i32, i32) {
    %c0_i32 = arith.constant 0 : i32
    %c0_i32_0 = arith.constant 0 : i32
    %c0_i32_1 = arith.constant 0 : i32
    return %c0_i32, %c0_i32_0 : i32, i32
  }
  func.func @transform_3(%arg0: i32) -> (i32, i32) {
    %c0_i32 = arith.constant 0 : i32
    %c0_i32_0 = arith.constant 0 : i32
    %c0_i32_1 = arith.constant 0 : i32
    return %c0_i32, %c0_i32_0 : i32, i32
  }
  func.func @transform_4(%arg0: i32) -> (i32, i32) {
    %c0_i32 = arith.constant 0 : i32
    %c0_i32_0 = arith.constant 0 : i32
    return %arg0, %c0_i32 : i32, i32
  }
}

</mosaic_0001>

<bundles_post_ra>
// kernel: neural_net_forward.1
= control target key start
LH: loop header
LB: loop body
LE: loop exit
PB: predicated region body
PF: predicated region fallthrough
CT: control target
= control target key end

     0   :  { %s671_s15 = smov 0   ;;  %s1029_s0 = inlined_call_operand.vmem [shape: f32[13,256], index: 0, kind: input, shape index: {}]   ;;  %s1030_s1 = inlined_call_operand.vmem [shape: f32[256,176], index: 1, kind: input, shape index: {}]   ;;  %s1031_s2 = inlined_call_operand.vmem [shape: f32[176,96], index: 2, kind: input, shape index: {}]   ;;  %s1032_s3 = inlined_call_operand.vmem [shape: f32[96,64], index: 3, kind: input, shape index: {}]   ;;  %s1033_s4 = inlined_call_operand.vmem [shape: f32[13,64], index: 4, kind: output, shape index: {}]  }
   0x1 LB: > { %s573_s16 = sadd.s32 4294967295, %s642_s15   ;;  %p577_p0 = scmp.ge.s32.totalorder %s642_s15, 1  ;;  %s642_s15 = sphi %s671_s15, %s14_s15  }
   0x2   : > { %p162_p1 = scmp.lt.s32.totalorder %s642_s15, 3 }
   0x4   : > { %p163_p2 = pnand %p577_p0, %p162_p1 }
   0x5   : > { %p187_p3 = scmp.lt.s32.totalorder (!%p163_p2), %s573_s16, 1 }
   0x6   : > { %166 = sbr.rel (%p163_p2) target bundleno = 664 (0x298), region = 36 }
   0xb   : > { %v229_v0 = vld [vmem:[%s1030_s1 + $0xf8] sm:$0xff]  ;;  %v228_v1 = vld [vmem:[%s1030_s1 + $0xf0] sm:$0xff]  ;;  %v227_v2 = vld [vmem:[%s1030_s1 + $0xe8] sm:$0xff]  ;;  %v644_v4 = vmov 0.0   ;;  %s1035_s16 = smov (!%p187_p3, %s573_s16), 1  ;;  %vm357_vm0 = vcmask 392192  }
   0xc   : > { %262 = vmatprep.subr.mxu0 %v229_v0  ;;  %v226_v3 = vld [vmem:[%s1030_s1 + $0xe0] sm:$0xff]  ;;  %361 = vmatprep.subr.mxu1 %v644_v4  ;;  %v225_v5 = vld [vmem:[%s1030_s1 + $0xd8] sm:$0xff]  ;;  %v224_v6 = vld [vmem:[%s1030_s1 + $0xd0] sm:$0xff]  ;;  %s585_s29 = sshll.u32 %s1035_s16, 4  ;;  %vm645_vm1 = vmmov 0   ;;  %vm444_vm2 = vcmask 785408  }
   0xd   : > { %263 = vmatpush1.msra.mxu0 %v228_v1  ;;  %v223_v7 = vld [vmem:[%s1030_s1 + $0xc8] sm:$0xff]  ;;  %v222_v8 = vld [vmem:[%s1030_s1 + $0xc0] sm:$0xff]  ;;  %v221_v9 = vld [vmem:[%s1030_s1 + $0xb8] sm:$0xff]  ;;  %s753_s12 = scalar_lea.vmem %s1029_s0, %s585_s29  ;;  %vm518_vm3 = vcmask 523264  }
   0xe   : > { %264 = vmatprep.subr.mxu0 %v227_v2  ;;  %v220_v10 = vld [vmem:[%s1030_s1 + $0xb0] sm:$0xff]  ;;  %v219_v11 = vld [vmem:[%s1030_s1 + $0xa8] sm:$0xff]  ;;  %v218_v12 = vld [vmem:[%s1030_s1 + $0xa0] sm:$0xff] }
   0xf   : > { %265 = vmatpush1.msra.mxu0 %v226_v3  ;;  %v217_v13 = vld [vmem:[%s1030_s1 + $0x98] sm:$0xff]  ;;  %v216_v14 = vld [vmem:[%s1030_s1 + $0x90] sm:$0xff]  ;;  %v215_v15 = vld [vmem:[%s1030_s1 + $0x88] sm:$0xff] }
  0x10   : > { %266 = vmatprep.subr.mxu0 %v225_v5  ;;  %v214_v16 = vld [vmem:[%s1030_s1 + $0x80] sm:$0xff]  ;;  %v213_v17 = vld [vmem:[%s1030_s1 + $0x78] sm:$0xff]  ;;  %v212_v18 = vld [vmem:[%s1030_s1 + $0x70] sm:$0xff] }
  0x11   : > { %267 = vmatpush1.msra.mxu0 %v224_v6  ;;  %v211_v19 = vld [vmem:[%s1030_s1 + $0x68] sm:$0xff]  ;;  %v210_v20 = vld [vmem:[%s1030_s1 + $0x60] sm:$0xff]  ;;  %v209_v21 = vld [vmem:[%s1030_s1 + $0x58] sm:$0xff] }
  0x12   : > { %268 = vmatprep.subr.mxu0 %v223_v7  ;;  %v208_v22 = vld [vmem:[%s1030_s1 + $0x50] sm:$0xff]  ;;  %v207_v23 = vld [vmem:[%s1030_s1 + $0x48] sm:$0xff]  ;;  %v206_v24 = vld [vmem:[%s1030_s1 + $0x40] sm:$0xff] }
  0x13   : > { %269 = vmatpush1.msra.mxu0 %v222_v8  ;;  %v197_v25 = vld [vmem:[%s753_s12 + $0x8] sm:$0xff]  ;;  %v205_v26 = vld [vmem:[%s1030_s1 + $0x38] sm:$0xff]  ;;  %v349_v28 = vld [vmem:[%s1031_s2 + $0x70] sm:$0xff] }
  0x14   : > { %270 = vmatprep.subr.mxu0 %v221_v9  ;;  %326 = vmatprep.mubr.f32.mxu0 %v197_v25  ;;  %v350_v27 = vld [vmem:[%s1031_s2 + $0x78] sm:$0xff]  ;;  %v204_v29 = vld [vmem:[%s1030_s1 + $0x30] sm:$0xff]  ;;  %v203_v30 = vld [vmem:[%s1030_s1 + $0x28] sm:$0xff] }
  0x15   : > { %271 = vmatpush1.msra.mxu0 %v220_v10  ;;  %362 = vmatpush1.msra.mxu1 %v350_v27  ;;  %v348_v31 = vld [vmem:[%s1031_s2 + $0x68] sm:$0xff]  ;;  %v202_v32 = vld [vmem:[%s1030_s1 + $0x20] sm:$0xff]  ;;  %v201_v33 = vld [vmem:[%s1030_s1 + $0x18] sm:$0xff] }
  0x16   : > { %272 = vmatprep.subr.mxu0 %v219_v11  ;;  %363 = vmatprep.subr.mxu1 %v644_v4  ;;  %v347_v34 = vld [vmem:[%s1031_s2 + $0x60] sm:$0xff]  ;;  %v200_v35 = vld [vmem:[%s1030_s1 + $0x10] sm:$0xff]  ;;  %v199_v36 = vld [vmem:[%s1030_s1 + $0x8] sm:$0xff] }
  0x17   : > { %273 = vmatpush1.msra.mxu0 %v218_v12  ;;  %364 = vmatpush1.msra.mxu1 %v349_v28  ;;  %v346_v37 = vld [vmem:[%s1031_s2 + $0x58] sm:$0xff]  ;;  %v198_v38 = vld [vmem:[%s1030_s1] sm:$0xff]  ;;  %v345_v40 = vld [vmem:[%s1031_s2 + $0x50] sm:$0xff] }
  0x18   : > { %274 = vmatprep.subr.mxu0 %v217_v13  ;;  %365 = vmatprep.subr.mxu1 %v644_v4  ;;  %v261_v39 = vld [vmem:[%s1030_s1 + $0x1f8] sm:$0xff]  ;;  %v260_v41 = vld [vmem:[%s1030_s1 + $0x1f0] sm:$0xff]  ;;  %v259_v42 = vld [vmem:[%s1030_s1 + $0x1e8] sm:$0xff] }
  0x19   : > { %275 = vmatpush1.msra.mxu0 %v216_v14  ;;  %366 = vmatpush1.msra.mxu1 %v348_v31  ;;  %v344_v43 = vld [vmem:[%s1031_s2 + $0x48] sm:$0xff]  ;;  %v258_v44 = vld [vmem:[%s1030_s1 + $0x1e0] sm:$0xff]  ;;  %v257_v45 = vld [vmem:[%s1030_s1 + $0x1d8] sm:$0xff] }
  0x1a   : > { %276 = vmatprep.subr.mxu0 %v215_v15  ;;  %367 = vmatprep.subr.mxu1 %v644_v4  ;;  %v343_v46 = vld [vmem:[%s1031_s2 + $0x40] sm:$0xff]  ;;  %v256_v47 = vld [vmem:[%s1030_s1 + $0x1d0] sm:$0xff]  ;;  %v255_v48 = vld [vmem:[%s1030_s1 + $0x1c8] sm:$0xff] }
  0x1b   : > { %277 = vmatpush1.msra.mxu0 %v214_v16  ;;  %368 = vmatpush1.msra.mxu1 %v347_v34  ;;  %v342_v49 = vld [vmem:[%s1031_s2 + $0x38] sm:$0xff]  ;;  %v254_v50 = vld [vmem:[%s1030_s1 + $0x1c0] sm:$0xff]  ;;  %v341_v52 = vld [vmem:[%s1031_s2 + $0x30] sm:$0xff] }
  0x1c   : > { %278 = vmatprep.subr.mxu0 %v213_v17  ;;  %369 = vmatprep.subr.mxu1 %v644_v4  ;;  %v253_v51 = vld [vmem:[%s1030_s1 + $0x1b8] sm:$0xff]  ;;  %v252_v53 = vld [vmem:[%s1030_s1 + $0x1b0] sm:$0xff]  ;;  %v251_v54 = vld [vmem:[%s1030_s1 + $0x1a8] sm:$0xff] }
  0x1d   : > { %279 = vmatpush1.msra.mxu0 %v212_v18  ;;  %370 = vmatpush1.msra.mxu1 %v346_v37  ;;  %v340_v55 = vld [vmem:[%s1031_s2 + $0x28] sm:$0xff]  ;;  %v250_v56 = vld [vmem:[%s1030_s1 + $0x1a0] sm:$0xff]  ;;  %v249_v57 = vld [vmem:[%s1030_s1 + $0x198] sm:$0xff] }
  0x1e   : > { %280 = vmatprep.subr.mxu0 %v211_v19  ;;  %371 = vmatprep.subr.mxu1 %v644_v4  ;;  %v339_v58 = vld [vmem:[%s1031_s2 + $0x20] sm:$0xff]  ;;  %v248_v59 = vld [vmem:[%s1030_s1 + $0x190] sm:$0xff]  ;;  %v247_v60 = vld [vmem:[%s1030_s1 + $0x188] sm:$0xff] }
  0x1f   : > { %281 = vmatpush1.msra.mxu0 %v210_v20  ;;  %372 = vmatpush1.msra.mxu1 %v345_v40  ;;  %v338_v61 = vld [vmem:[%s1031_s2 + $0x18] sm:$0xff]  ;;  %v246_v62 = vld [vmem:[%s1030_s1 + $0x180] sm:$0xff]  ;;  %v337_v0 = vld [vmem:[%s1031_s2 + $0x10] sm:$0xff] }
  0x20   : > { %282 = vmatprep.subr.mxu0 %v209_v21  ;;  %373 = vmatprep.subr.mxu1 %v644_v4  ;;  %v245_v63 = vld [vmem:[%s1030_s1 + $0x178] sm:$0xff]  ;;  %v244_v1 = vld [vmem:[%s1030_s1 + $0x170] sm:$0xff]  ;;  %v243_v2 = vld [vmem:[%s1030_s1 + $0x168] sm:$0xff] }
  0x21   : > { %283 = vmatpush1.msra.mxu0 %v208_v22  ;;  %374 = vmatpush1.msra.mxu1 %v344_v43  ;;  %v336_v3 = vld [vmem:[%s1031_s2 + $0x8] sm:$0xff]  ;;  %v242_v5 = vld [vmem:[%s1030_s1 + $0x160] sm:$0xff]  ;;  %v241_v6 = vld [vmem:[%s1030_s1 + $0x158] sm:$0xff] }
  0x22   : > { %284 = vmatprep.subr.mxu0 %v207_v23  ;;  %375 = vmatprep.subr.mxu1 %v644_v4  ;;  %v335_v7 = vld [vmem:[%s1031_s2] sm:$0xff]  ;;  %v240_v8 = vld [vmem:[%s1030_s1 + $0x150] sm:$0xff]  ;;  %v239_v9 = vld [vmem:[%s1030_s1 + $0x148] sm:$0xff] }
  0x23   : > { %285 = vmatpush1.msra.mxu0 %v206_v24  ;;  %376 = vmatpush1.msra.mxu1 %v343_v46  ;;  %v356_v10 = vld [vmem:[%s1031_s2 + $0xa8] sm:$0xff]  ;;  %v238_v11 = vld [vmem:[%s1030_s1 + $0x140] sm:$0xff]  ;;  %v237_v12 = vld [vmem:[%s1030_s1 + $0x138] sm:$0xff] }
  0x24   : > { %286 = vmatprep.subr.mxu0 %v205_v26  ;;  %377 = vmatprep.subr.mxu1 %v644_v4  ;;  %v355_v13 = vld [vmem:[%s1031_s2 + $0xa0] sm:$0xff]  ;;  %v236_v14 = vld [vmem:[%s1030_s1 + $0x130] sm:$0xff]  ;;  %v235_v15 = vld [vmem:[%s1030_s1 + $0x128] sm:$0xff] }
  0x25   : > { %287 = vmatpush1.msra.mxu0 %v204_v29  ;;  %378 = vmatpush1.msra.mxu1 %v342_v49  ;;  %v354_v16 = vld [vmem:[%s1031_s2 + $0x98] sm:$0xff]  ;;  %v234_v17 = vld [vmem:[%s1030_s1 + $0x120] sm:$0xff]  ;;  %v232_v19 = vld [vmem:[%s1030_s1 + $0x110] sm:$0xff] }
  0x26   : > { %288 = vmatprep.subr.mxu0 %v203_v30  ;;  %379 = vmatprep.subr.mxu1 %v644_v4  ;;  %v233_v18 = vld [vmem:[%s1030_s1 + $0x118] sm:$0xff]  ;;  %v231_v20 = vld [vmem:[%s1030_s1 + $0x108] sm:$0xff]  ;;  %v230_v21 = vld [vmem:[%s1030_s1 + $0x100] sm:$0xff] }
  0x27   : > { %289 = vmatpush1.msra.mxu0 %v202_v32  ;;  %380 = vmatpush1.msra.mxu1 %v341_v52  ;;  %v196_v22 = vld [vmem:[%s753_s12] sm:$0xff]  ;;  %v353_v23 = vld [vmem:[%s1031_s2 + $0x90] sm:$0xff]  ;;  %v352_v24 = vld [vmem:[%s1031_s2 + $0x88] sm:$0xff]  ;;  %s580_s12 = sshll.u32 %s1035_s16, 3 }
  0x28   : > { %290 = vmatprep.subr.mxu0 %v201_v33  ;;  %381 = vmatprep.subr.mxu1 %v644_v4  ;;  %v351_v25 = vld [vmem:[%s1031_s2 + $0x80] sm:$0xff]  ;;  %v443_v30 = vld [vmem:[%s1032_s3 + $0x58] sm:$0xff]  ;;  %v442_v31 = vld [vmem:[%s1032_s3 + $0x50] sm:$0xff]  ;;  %s195_s6 = scalar_lea.vmem %s1033_s4, %s580_s12 }
  0x29   : > { %291 = vmatpush1.msra.mxu0 %v200_v35  ;;  %382 = vmatpush1.msra.mxu1 %v340_v55  ;;  %v441_v32 = vld [vmem:[%s1032_s3 + $0x48] sm:$0xff]  ;;  %v440_v33 = vld [vmem:[%s1032_s3 + $0x40] sm:$0xff]  ;;  %v439_v34 = vld [vmem:[%s1032_s3 + $0x38] sm:$0xff] }
  0x2a   : > { %292 = vmatprep.subr.mxu0 %v199_v36  ;;  %383 = vmatprep.subr.mxu1 %v644_v4  ;;  %v438_v35 = vld [vmem:[%s1032_s3 + $0x30] sm:$0xff]  ;;  %v437_v36 = vld [vmem:[%s1032_s3 + $0x28] sm:$0xff]  ;;  %v436_v37 = vld [vmem:[%s1032_s3 + $0x20] sm:$0xff] }
  0x2b   : > { %293 = vmatpush1.msra.mxu0 %v198_v38  ;;  %384 = vmatpush1.msra.mxu1 %v339_v58  ;;  %v435_v38 = vld [vmem:[%s1032_s3 + $0x18] sm:$0xff]  ;;  %v433_v40 = vld [vmem:[%s1032_s3 + $0x8] sm:$0xff] }
  0x2c   : > { %294 = vmatprep.subr.mxu0 %v261_v39  ;;  %385 = vmatprep.subr.mxu1 %v644_v4  ;;  %v434_v39 = vld [vmem:[%s1032_s3 + $0x10] sm:$0xff] }
  0x2d   : > { %295 = vmatpush2.msra.mxu0 %v260_v41  ;;  %386 = vmatpush1.msra.mxu1 %v338_v61  ;;  %v432_v41 = vld [vmem:[%s1032_s3] sm:$0xff] }
  0x2e   : > { %296 = vmatprep.subr.mxu0 %v259_v42  ;;  %387 = vmatprep.subr.mxu1 %v644_v4 }
  0x2f   : > { %297 = vmatpush2.msra.mxu0 %v258_v44  ;;  %388 = vmatpush1.msra.mxu1 %v337_v0 }
  0x30   : > { %298 = vmatprep.subr.mxu0 %v257_v45  ;;  %389 = vmatprep.subr.mxu1 %v644_v4 }
  0x31   : > { %299 = vmatpush2.msra.mxu0 %v256_v47  ;;  %390 = vmatpush1.msra.mxu1 %v336_v3 }
  0x32   : > { %300 = vmatprep.subr.mxu0 %v255_v48  ;;  %391 = vmatprep.subr.mxu1 %v644_v4 }
  0x33   : > { %301 = vmatpush2.msra.mxu0 %v254_v50  ;;  %392 = vmatpush1.msra.mxu1 %v335_v7 }
  0x34   : > { %302 = vmatprep.subr.mxu0 %v253_v51  ;;  %413 = vmatprep.subr.mxu1 %v644_v4 }
  0x35   : > { %303 = vmatpush2.msra.mxu0 %v252_v53  ;;  %414 = vmatpush2.msra.mxu1 %v356_v10 }
  0x36   : > { %304 = vmatprep.subr.mxu0 %v251_v54  ;;  %415 = vmatprep.subr.mxu1 %v644_v4 }
  0x37   : > { %305 = vmatpush2.msra.mxu0 %v250_v56  ;;  %416 = vmatpush2.msra.mxu1 %v355_v13 }
  0x38   : > { %306 = vmatprep.subr.mxu0 %v249_v57  ;;  %417 = vmatprep.subr.mxu1 %v644_v4 }
  0x39   : > { %307 = vmatpush2.msra.mxu0 %v248_v59  ;;  %418 = vmatpush2.msra.mxu1 %v354_v16 }
  0x3a   : > { %308 = vmatprep.subr.mxu0 %v247_v60  ;;  %419 = vmatprep.subr.mxu1 %v644_v4 }
  0x3b   : > { %309 = vmatpush2.msra.mxu0 %v246_v62  ;;  %420 = vmatpush2.msra.mxu1 %v353_v23 }
  0x3c   : > { %310 = vmatprep.subr.mxu0 %v245_v63  ;;  %421 = vmatprep.subr.mxu1 %v644_v4 }
  0x3d   : > { %311 = vmatpush2.msra.mxu0 %v244_v1  ;;  %422 = vmatpush2.msra.mxu1 %v352_v24 }
  0x3e   : > { %312 = vmatprep.subr.mxu0 %v243_v2  ;;  %423 = vmatprep.subr.mxu1 %v644_v4 }
  0x3f   : > { %313 = vmatpush2.msra.mxu0 %v242_v5  ;;  %424 = vmatpush2.msra.mxu1 %v351_v25 }
  0x40   : > { %314 = vmatprep.subr.mxu0 %v241_v6  ;;  %599 = vmatprep.subr.mxu1 %v644_v4 }
  0x41   : > { %315 = vmatpush2.msra.mxu0 %v240_v8 }
  0x42   : > { %316 = vmatprep.subr.mxu0 %v239_v9 }
  0x43   : > { %317 = vmatpush2.msra.mxu0 %v238_v11 }
  0x44   : > { %318 = vmatprep.subr.mxu0 %v237_v12 }
  0x45   : > { %319 = vmatpush2.msra.mxu0 %v236_v14 }
  0x46   : > { %320 = vmatprep.subr.mxu0 %v235_v15 }
  0x47   : > { %321 = vmatpush2.msra.mxu0 %v234_v17 }
  0x48   : > { %322 = vmatprep.subr.mxu0 %v233_v18 }
  0x49   : > { %323 = vmatpush2.msra.mxu0 %v232_v19 }
  0x4a   : > { %324 = vmatprep.subr.mxu0 %v231_v20 }
  0x4b   : > { %325 = vmatpush2.msra.mxu0 %v230_v21 }
  0x4c   : > { %327 = vmatmul.mubr.f32.vlgmr.msra.gmra.mxu0 %v196_v22 }
 0x10c   : > { %v328_v26 = vpop.f32.mrf.mxu0 }
 0x10d   : > { %v333_v29 = vmax.f32 %v328_v26, 0.0 }
 0x10e   : > { %v330_v27 = vpop.f32.mrf.mxu0 }
 0x10f   : > { %v334_v28 = vmax.f32 %v330_v27, 0.0 }
 0x111   : > { %581 = vmatprep.mubr.msk.f32.mxu1 %vm357_vm0, %v334_v28 }
 0x112   : > { %426 = vmatmul.mubr.f32.vlgmr.msra.gmra.mxu1 %v333_v29 }
 0x113   : > { %600 = vmatpush3.msra.mxu1 %v443_v30  ;;  %623 = vmatprep.mubr.msk.f32.mxu1 %vm645_vm1, %v644_v4 }
 0x114   : > { %601 = vmatprep.subr.mxu1 %v644_v4 }
 0x115   : > { %602 = vmatpush3.msra.mxu1 %v442_v31 }
 0x116   : > { %603 = vmatprep.subr.mxu1 %v644_v4 }
 0x117   : > { %604 = vmatpush3.msra.mxu1 %v441_v32 }
 0x118   : > { %605 = vmatprep.subr.mxu1 %v644_v4 }
 0x119   : > { %606 = vmatpush3.msra.mxu1 %v440_v33 }
 0x11a   : > { %607 = vmatprep.subr.mxu1 %v644_v4 }
 0x11b   : > { %608 = vmatpush3.msra.mxu1 %v439_v34 }
 0x11c   : > { %609 = vmatprep.subr.mxu1 %v644_v4 }
 0x11d   : > { %610 = vmatpush3.msra.mxu1 %v438_v35 }
 0x11e   : > { %611 = vmatprep.subr.mxu1 %v644_v4 }
 0x11f   : > { %612 = vmatpush3.msra.mxu1 %v437_v36 }
 0x120   : > { %613 = vmatprep.subr.mxu1 %v644_v4 }
 0x121   : > { %614 = vmatpush3.msra.mxu1 %v436_v37 }
 0x122   : > { %615 = vmatprep.subr.mxu1 %v644_v4 }
 0x123   : > { %616 = vmatpush3.msra.mxu1 %v435_v38 }
 0x124   : > { %617 = vmatprep.subr.mxu1 %v644_v4 }
 0x125   : > { %618 = vmatpush3.msra.mxu1 %v434_v39 }
 0x126   : > { %619 = vmatprep.subr.mxu1 %v644_v4 }
 0x127   : > { %620 = vmatpush3.msra.mxu1 %v433_v40 }
 0x128   : > { %621 = vmatprep.subr.mxu1 %v644_v4 }
 0x129   : > { %622 = vmatpush3.msra.mxu1 %v432_v41 }
 0x1d2   : > { %v427_v42 = vpop.f32.mrf.mxu1 }
 0x1d3   : > { %v431_v43 = vmax.f32 %v427_v42, 0.0 }
 0x1d4   : > { %v429_v44 = vpop.f32.mrf.mxu1 }
 0x1d5   : > { %624 = vmatmul.mubr.msk.f32.vlgmr.msra.gmra.mxu1 %vm444_vm2, %v431_v43 }
 0x295   : > { %v514_v45 = vpop.f32.mrf.mxu1 }
 0x296   : > { %519 = vst.msk [vmem:[%s195_s6] sm:$0xff] %vm518_vm3, %v514_v45 }
 0x297   : > { %v625_v46 = vpop.f32.mrf.mxu1 }
 0x298 PF: > { %s14_s15 = sadd.s32 1, %s642_s15  }
 0x299   : > { %p11_p4 = scmp.ge.s32.totalorder %s14_s15, 4  }
 0x29b   :  { %13 = sbr.rel (!%p11_p4) target bundleno = 1 (0x1), region = 66 }

</bundles_post_ra>
